<compile_context>
chip_gen: v7x
topology: tpu7x:2x2x1
jax: 0.10.0
libtpu: 0.0.40
codegen_flags: <defaults>
</compile_context>

<pallas_src>
import jax
import jax.numpy as jnp
from jax.experimental import pallas as pl
from jax.experimental.pallas import tpu as pltpu

LAST_CHANNEL = 1280  # torchvision models.mobilenet_v2().last_channel

NUM_SEASON = 4
NUM_BRAND = 8
NUM_TYP = 16
NUM_YEAR = 4

_HEAD_NAMES = ("season", "brand", "typ", "year")
_LANE = 128  # lane-dense fused-head output width


def _fused_heads_kernel(feat_ref, w_ref, b_ref, out_ref):
    # feat_ref: (tile_n, S, C) bf16 — C=1280 on lanes, S=H*W on sublanes.
    # AdaptiveAvgPool2d((1,1)) + flatten == mean over S; the 1/S scale is folded
    # into w_ref, so pooling is a plain sum over the sublane axis.  Widen to f32
    # before the adds (v5e VPU has no bf16 ALU); accumulation stays f32.
    pooled = jnp.sum(feat_ref[...].astype(jnp.float32), axis=1)      # (tile_n, C)
    # Dropout(p=0.2) -> identity (eval mode).  One MXU matmul covers all four
    # heads; the 128-wide padded output gives a single unmasked lane-dense store.
    out_ref[...] = (
        jnp.dot(pooled, w_ref[...], preferred_element_type=jnp.float32)
        + b_ref[...]
    )


def _pick_batch_tile(n):
    # Largest tile in {32, 16, 8} that divides N.  For N >= 16 additionally
    # require tile <= N // 2 so the "parallel" batch axis has >= 2 grid steps
    # (lets v7x shard the batch across its two TensorCores).  Per-buffer bf16
    # feature footprint is tile * 49 * 1280 * 2B ~= tile * 123 KiB, so even
    # tile 32 is ~3.8 MiB (~7.7 MiB double-buffered) — comfortably inside every
    # generation's VMEM (v5e 16 MiB default scoped, v7x 64 MiB physical).
    for t in (32, 16, 8):
        if n >= t and n % t == 0 and (n < 16 or t <= n // 2):
            return t
    return n  # tiny / odd batches: single grid step, block == full batch dim.


def multi_output_heads(feat_nhwc, params):
    """feat_nhwc: (N, H, W, C) backbone features -> dict of four f32 logit arrays."""
    N, H, W, C = feat_nhwc.shape
    S = H * W
    # Free reshape (minor dim C unchanged): (N, H, W, C) -> (N, S, C).
    feat = feat_nhwc.reshape(N, S, C).astype(jnp.bfloat16)

    # Fuse the four heads: concatenate weights/biases, fold the 1/S pooling
    # scale into the weights, zero-pad the output dim to a lane-dense 128.
    # Weights stay f32 (tiny: 1280*128*4 = 640 KiB) for accuracy.
    ws = [params[k][0] for k in _HEAD_NAMES]
    bs = [params[k][1] for k in _HEAD_NAMES]
    head_sizes = [w.shape[1] for w in ws]
    n_out = sum(head_sizes)
    out_pad = -(-n_out // _LANE) * _LANE
    w_cat = jnp.concatenate(ws, axis=1).astype(jnp.float32) * (1.0 / float(S))
    b_cat = jnp.concatenate(bs, axis=1).astype(jnp.float32)
    w_cat = jnp.pad(w_cat, ((0, 0), (0, out_pad - n_out)))            # (C, 128)
    b_cat = jnp.pad(b_cat, ((0, 0), (0, out_pad - n_out)))            # (1, 128)

    tile_n = _pick_batch_tile(N)
    grid = (N // tile_n,)

    cost = pl.CostEstimate(
        flops=2 * N * C * out_pad + N * S * C,
        transcendentals=0,
        bytes_accessed=(feat.size * 2                     # bf16 features
                        + (w_cat.size + b_cat.size) * 4   # f32 fused params
                        + N * out_pad * 4),               # f32 fused logits
    )

    fused = pl.pallas_call(
        _fused_heads_kernel,
        grid=grid,
        in_specs=[
            pl.BlockSpec((tile_n, S, C), lambda i: (i, 0, 0)),    # feature tile
            pl.BlockSpec((C, out_pad), lambda i: (0, 0)),         # fused weights
            pl.BlockSpec((1, out_pad), lambda i: (0, 0)),         # fused bias
        ],
        out_specs=pl.BlockSpec((tile_n, out_pad), lambda i: (i, 0)),
        out_shape=jax.ShapeDtypeStruct((N, out_pad), jnp.float32),
        compiler_params=pltpu.CompilerParams(
            dimension_semantics=("parallel",),
            # Worst case (tile 32): 2 x 3.8 MiB bf16 feature buffers + ~8 MiB f32
            # widened pooling intermediate + 2 x 0.64 MiB weight buffers ~= 17 MiB.
            vmem_limit_bytes=40 * 1024 * 1024,
        ),
        cost_estimate=cost,
    )(feat, w_cat, b_cat)

    out = {}
    off = 0
    for name, sz in zip(_HEAD_NAMES, head_sizes):
        out[name] = fused[:, off:off + sz]
        off += sz
    return out


def _init_linear(key, in_features, out_features):
    # Match nn.Linear default init: U(-1/sqrt(in), 1/sqrt(in)) for W and b.
    kw, kb = jax.random.split(key)
    bound = 1.0 / (in_features ** 0.5)
    w = jax.random.uniform(kw, (in_features, out_features), jnp.float32,
                           minval=-bound, maxval=bound)   # stored as (in, out) = W.T
    b = jax.random.uniform(kb, (1, out_features), jnp.float32,
                           minval=-bound, maxval=bound)
    return w, b


def _reference(feat_nhwc, params):
    pooled = jnp.mean(feat_nhwc.astype(jnp.float32), axis=(1, 2))   # (N, C)
    out = {}
    for name in _HEAD_NAMES:
        w, b = params[name]
        out[name] = pooled @ w + b
    return out


if __name__ == "__main__":
    key = jax.random.PRNGKey(0)
    k_feat, k_s, k_b, k_t, k_y = jax.random.split(key, 5)

    # Small, MobileNetV2-consistent feature-map shape: (N, 7, 7, last_channel),
    # NHWC layout, bf16 activations (the kernel's native diet).
    N, C, H, W = 2, LAST_CHANNEL, 7, 7
    feat = jax.random.normal(k_feat, (N, H, W, C), dtype=jnp.float32)
    feat = feat.astype(jnp.bfloat16)

    params = {
        "season": _init_linear(k_s, C, NUM_SEASON),
        "brand": _init_linear(k_b, C, NUM_BRAND),
        "typ": _init_linear(k_t, C, NUM_TYP),
        "year": _init_linear(k_y, C, NUM_YEAR),
    }

    out = multi_output_heads(feat, params)
    out = jax.block_until_ready(out)

    ref = _reference(feat, params)
    for name in _HEAD_NAMES:
        assert out[name].shape == ref[name].shape, name
        # bf16 features + MXU matmul (f32 accumulation) vs. the plain-XLA f32
        # reference agree to ~1e-3; tolerance still catches real logic errors.
        assert jnp.allclose(out[name], ref[name], atol=1e-2, rtol=1e-2), name

    print("KERNEL_OK")
</pallas_src>

<mosaic_0001>
module attributes {stable_mosaic.version = 11 : i64} {
  func.func @_fused_heads_kernel(%arg0: i32, %arg1: memref<2x49x1280xbf16, #tpu.memory_space<vmem>>, %arg2: memref<1280x128xf32, #tpu.memory_space<vmem>>, %arg3: memref<1x128xf32, #tpu.memory_space<vmem>>, %arg4: memref<2x128xf32, #tpu.memory_space<vmem>>) attributes {dimension_semantics = [#tpu.dimension_semantics<parallel>], iteration_bounds = array<i64: 1>, scalar_prefetch = 0 : i64, scratch_operands = 0 : i64, tpu.core_type = #tpu.core_type<tc>, window_params = [{transform_indices = @transform_0, window_bounds = array<i64: 2, 49, 1280>}, {pipeline_mode = #tpu.pipeline_mode<synchronous>, transform_indices = @transform_1, window_bounds = array<i64: 1280, 128>}, {pipeline_mode = #tpu.pipeline_mode<synchronous>, transform_indices = @transform_2, window_bounds = array<i64: 1, 128>}, {transform_indices = @transform_3, window_bounds = array<i64: 2, 128>}]} {
    %c0 = arith.constant 0 : index
    %c0_0 = arith.constant 0 : index
    %c0_1 = arith.constant 0 : index
    %0 = vector.load %arg1[%c0, %c0_0, %c0_1] : memref<2x49x1280xbf16, #tpu.memory_space<vmem>>, vector<2x49x1280xbf16>
    %1 = arith.extf %0 : vector<2x49x1280xbf16> to vector<2x49x1280xf32>
    %cst = arith.constant dense<0.000000e+00> : vector<2x1280xf32>
    %2 = vector.multi_reduction <add>, %1, %cst [1] : vector<2x49x1280xf32> to vector<2x1280xf32>
    %c0_2 = arith.constant 0 : index
    %c0_3 = arith.constant 0 : index
    %3 = vector.load %arg2[%c0_2, %c0_3] : memref<1280x128xf32, #tpu.memory_space<vmem>>, vector<1280x128xf32>
    %cst_4 = arith.constant dense<0.000000e+00> : vector<2x128xf32>
    %4 = tpu.matmul %2, %3, %cst_4 {dimension_numbers = #tpu.dot_dimension_numbers<[1], [0], [0], [1], [0, 0, 1, 1], [], []>} : vector<2x1280xf32>, vector<1280x128xf32>, vector<2x128xf32> -> vector<2x128xf32>
    %c0_5 = arith.constant 0 : index
    %c0_6 = arith.constant 0 : index
    %5 = vector.load %arg3[%c0_5, %c0_6] : memref<1x128xf32, #tpu.memory_space<vmem>>, vector<1x128xf32>
    %6 = vector.broadcast %5 : vector<1x128xf32> to vector<2x128xf32>
    %7 = arith.addf %4, %6 : vector<2x128xf32>
    %c0_7 = arith.constant 0 : index
    %c0_8 = arith.constant 0 : index
    %8 = vector.load %arg4[%c0_7, %c0_8] : memref<2x128xf32, #tpu.memory_space<vmem>>, vector<2x128xf32>
    tpu.vector_store %arg4[%c0_7, %c0_8], %7 {strides = array<i32>} : memref<2x128xf32, #tpu.memory_space<vmem>>, vector<2x128xf32>,
    return
  }
  func.func @transform_0(%arg0: i32) -> (i32, i32, i32) {
    %c0_i32 = arith.constant 0 : i32
    %c0_i32_0 = arith.constant 0 : i32
    %c0_i32_1 = arith.constant 0 : i32
    return %arg0, %c0_i32, %c0_i32_0 : i32, i32, i32
  }
  func.func @transform_1(%arg0: i32) -> (i32, i32) {
    %c0_i32 = arith.constant 0 : i32
    %c0_i32_0 = arith.constant 0 : i32
    %c0_i32_1 = arith.constant 0 : i32
    return %c0_i32, %c0_i32_0 : i32, i32
  }
  func.func @transform_2(%arg0: i32) -> (i32, i32) {
    %c0_i32 = arith.constant 0 : i32
    %c0_i32_0 = arith.constant 0 : i32
    %c0_i32_1 = arith.constant 0 : i32
    return %c0_i32, %c0_i32_0 : i32, i32
  }
  func.func @transform_3(%arg0: i32) -> (i32, i32) {
    %c0_i32 = arith.constant 0 : i32
    %c0_i32_0 = arith.constant 0 : i32
    return %arg0, %c0_i32 : i32, i32
  }
}

</mosaic_0001>

<bundles_post_ra>
// kernel: tpu_custom_call.1
= control target key start
LH: loop header
LB: loop body
LE: loop exit
PB: predicated region body
PF: predicated region fallthrough
CT: control target
= control target key end

     0   :  { %8 = vsyncpa [#allocation3], 0  ;;  %s2314_s0 = inlined_call_operand.vmem [shape: bf16[2,49,1280], index: 0, kind: input, shape index: {}]   ;;  %s2315_s1 = inlined_call_operand.hbm [shape: f32[1280,128], index: 1, kind: input, shape index: {}]   ;;  %s2316_s2 = inlined_call_operand.vmem [shape: f32[1,128], index: 2, kind: input, shape index: {}]   ;;  %s2317_s3 = inlined_call_operand.hbm [shape: f32[2,128], index: 3, kind: output, shape index: {}]  }
   0x1   :  { %9 = vsyncpa [#allocation4], 0  ;;  %s1462_s12 = smov [#allocation2]   ;;  %s1414_s16 = scalar_lea.hbm %s2315_s1, 20480 }
   0x2   :  { %s17_s13 = sshll.u32 %s1462_s12, 4  ;;  %p1415_p0 = scmp.ne.s32.totalorder %s2315_s1, %s1414_s16  ;;  %s18_s13 = int_to_ptr.vmem [resolvable:$true] %s17_s13 }
   0x3   :  { %p1418_p1 = scmp.lt.u32.totalorder %s1414_s16, %s2315_s1 }
   0x5   :  { %p1420_p2 = pnand %p1418_p1, %p1415_p0 }
   0x7   :  { %1423 = shalt.err (!%p1420_p2)
}
   0x8   :  { %s1424_s21 = scalar_lea.vmem %s18_s13, 20480  ;;  %p1429_p4 = scmp.lt.s32.totalorder %s18_s13, %s18_s13 }
   0x9   :  { %p1425_p3 = scmp.ne.s32.totalorder %s18_s13, %s1424_s21  ;;  %p1430_p5 = scmp.lt.s32.totalorder %s1424_s21, %s1424_s21 }
   0xb   :  { %p1431_p6 = por %p1430_p5, %p1429_p4 }
   0xd   :  { %p1432_p7 = pnand %p1431_p6, %p1425_p3 }
   0xf   :  { %1435 = shalt.err (!%p1432_p7)
}
  0x10   :  { %s1463_s22 = smov 128   ;;  %s1464_s23 = smov 8  }
  0x11   :  { %23 = dma.hbm_to_vmem [thread:$0]  %s2315_s1, 20480, %s18_s13, [#allocation3], %s1463_s22, %s1463_s22, %s1464_s23  }
  0x12   :  { %1458 = dma.done.wait [#allocation3], 20480  }
  0x13   :  { %1459 = vsyncadd [#allocation3], 4294946816  ;;  %v516_v0 = vld [vmem:[#allocation2 + $0x80] sm:$0xff]  ;;  %v517_v1 = vld [vmem:[#allocation2 + $0x88] sm:$0xff]  ;;  %vm244_vm0 = vcmask 1040384   ;;  %vm687_vm1 = vcmask 1041409  }
  0x14   :  { %v500_v2 = vld [vmem:[#allocation2] sm:$0xff]  ;;  %v1250_v3 = vpack.c.bf16 %v517_v1, %v516_v0  ;;  %v501_v4 = vld [vmem:[#allocation2 + $0x8] sm:$0xff]  ;;  %v518_v11 = vld [vmem:[#allocation2 + $0x90] sm:$0xff]  ;;  %s1465_s26 = smov [#allocation5]  }
  0x15   :  { %v548_v5 = vld [vmem:[#allocation2 + $0x180] sm:$0xff]  ;;  %v549_v6 = vld [vmem:[#allocation2 + $0x188] sm:$0xff]  ;;  %v1252_v7 = vpack.c.bf16 %v501_v4, %v500_v2  ;;  %v519_v13 = vld [vmem:[#allocation2 + $0x98] sm:$0xff]  ;;  %s1065_s27 = sshll.u32 %s1465_s26, 4  ;;  %s1066_s27 = int_to_ptr.vmem [resolvable:$true] %s1065_s27 }
  0x16   :  { %v1282_v8 = vpack.c.bf16 %v549_v6, %v548_v5  ;;  %v532_v9 = vld [vmem:[#allocation2 + $0x100] sm:$0xff]  ;;  %v533_v10 = vld [vmem:[#allocation2 + $0x108] sm:$0xff]  ;;  %1251 = vmatprep.subr.bf16.mxu0 %v1250_v3  ;;  %v502_v14 = vld [vmem:[#allocation2 + $0x10] sm:$0xff]  ;;  %v1254_v16 = vpack.c.bf16 %v519_v13, %v518_v11  ;;  %p1441_p9 = scmp.lt.s32.totalorder %s1066_s27, %s1066_s27 }
  0x17   :  { %v1284_v12 = vpack.c.bf16 %v533_v10, %v532_v9  ;;  %v503_v15 = vld [vmem:[#allocation2 + $0x18] sm:$0xff]  ;;  %1253 = vmatpush3.bf16.msra.mxu0 %v1252_v7  ;;  %v550_v18 = vld [vmem:[#allocation2 + $0x190] sm:$0xff]  ;;  %v520_v23 = vld [vmem:[#allocation2 + $0xa0] sm:$0xff] }
  0x18   :  { %1283 = vmatprep.subr.bf16.mxu1 %v1282_v8  ;;  %v1256_v17 = vpack.c.bf16 %v503_v15, %v502_v14  ;;  %v551_v19 = vld [vmem:[#allocation2 + $0x198] sm:$0xff]  ;;  %v534_v20 = vld [vmem:[#allocation2 + $0x110] sm:$0xff]  ;;  %v521_v24 = vld [vmem:[#allocation2 + $0xa8] sm:$0xff]  ;;  %1255 = vmatprep.subr.bf16.mxu0 %v1254_v16 }
  0x19   :  { %1285 = vmatpush3.bf16.msra.mxu1 %v1284_v12  ;;  %v1286_v21 = vpack.c.bf16 %v551_v19, %v550_v18  ;;  %v535_v22 = vld [vmem:[#allocation2 + $0x118] sm:$0xff]  ;;  %v1258_v26 = vpack.c.bf16 %v521_v24, %v520_v23  ;;  %v504_v27 = vld [vmem:[#allocation2 + $0x20] sm:$0xff]  ;;  %v505_v28 = vld [vmem:[#allocation2 + $0x28] sm:$0xff] }
  0x1a   :  { %v1288_v25 = vpack.c.bf16 %v535_v22, %v534_v20  ;;  %v552_v29 = vld [vmem:[#allocation2 + $0x1a0] sm:$0xff]  ;;  %v553_v30 = vld [vmem:[#allocation2 + $0x1a8] sm:$0xff]  ;;  %v1260_v33 = vpack.c.bf16 %v505_v28, %v504_v27  ;;  %v522_v35 = vld [vmem:[#allocation2 + $0xb0] sm:$0xff] }
  0x1b   :  { %1287 = vmatprep.subr.bf16.mxu1 %v1286_v21  ;;  %v536_v31 = vld [vmem:[#allocation2 + $0x120] sm:$0xff]  ;;  %v537_v32 = vld [vmem:[#allocation2 + $0x128] sm:$0xff]  ;;  %1257 = vmatpush3.bf16.msra.mxu0 %v1256_v17  ;;  %v1290_v34 = vpack.c.bf16 %v553_v30, %v552_v29  ;;  %v523_v36 = vld [vmem:[#allocation2 + $0xb8] sm:$0xff] }
  0x1c   :  { %v506_v37 = vld [vmem:[#allocation2 + $0x30] sm:$0xff]  ;;  %1259 = vmatprep.subr.bf16.mxu0 %v1258_v26  ;;  %v1292_v38 = vpack.c.bf16 %v537_v32, %v536_v31  ;;  %v1262_v39 = vpack.c.bf16 %v523_v36, %v522_v35  ;;  %v507_v40 = vld [vmem:[#allocation2 + $0x38] sm:$0xff]  ;;  %v524_v46 = vld [vmem:[#allocation2 + $0xc0] sm:$0xff] }
  0x1d   :  { %1289 = vmatpush3.bf16.msra.mxu1 %v1288_v25  ;;  %v554_v41 = vld [vmem:[#allocation2 + $0x1b0] sm:$0xff]  ;;  %v555_v42 = vld [vmem:[#allocation2 + $0x1b8] sm:$0xff]  ;;  %v525_v47 = vld [vmem:[#allocation2 + $0xc8] sm:$0xff]  ;;  %v1264_v48 = vpack.c.bf16 %v507_v40, %v506_v37 }
  0x1e   :  { %1291 = vmatprep.subr.bf16.mxu1 %v1290_v34  ;;  %v1294_v43 = vpack.c.bf16 %v555_v42, %v554_v41  ;;  %v538_v44 = vld [vmem:[#allocation2 + $0x130] sm:$0xff]  ;;  %v539_v45 = vld [vmem:[#allocation2 + $0x138] sm:$0xff]  ;;  %v508_v49 = vld [vmem:[#allocation2 + $0x40] sm:$0xff]  ;;  %v1266_v53 = vpack.c.bf16 %v525_v47, %v524_v46 }
  0x1f   :  { %1261 = vmatpush3.bf16.msra.mxu0 %v1260_v33  ;;  %v556_v50 = vld [vmem:[#allocation2 + $0x1c0] sm:$0xff]  ;;  %v557_v51 = vld [vmem:[#allocation2 + $0x1c8] sm:$0xff]  ;;  %v1296_v52 = vpack.c.bf16 %v539_v45, %v538_v44  ;;  %v526_v58 = vld [vmem:[#allocation2 + $0xd0] sm:$0xff] }
  0x20   :  { %1263 = vmatprep.subr.bf16.mxu0 %v1262_v39  ;;  %v509_v54 = vld [vmem:[#allocation2 + $0x48] sm:$0xff]  ;;  %v540_v55 = vld [vmem:[#allocation2 + $0x140] sm:$0xff]  ;;  %v1298_v57 = vpack.c.bf16 %v557_v51, %v556_v50  ;;  %v527_v59 = vld [vmem:[#allocation2 + $0xd8] sm:$0xff] }
  0x21   :  { %1293 = vmatpush3.bf16.msra.mxu1 %v1292_v38  ;;  %v541_v56 = vld [vmem:[#allocation2 + $0x148] sm:$0xff]  ;;  %v558_v60 = vld [vmem:[#allocation2 + $0x1d0] sm:$0xff]  ;;  %v511_v62 = vld [vmem:[#allocation2 + $0x58] sm:$0xff]  ;;  %v1268_v2 = vpack.c.bf16 %v509_v54, %v508_v49  ;;  %v1270_v7 = vpack.c.bf16 %v527_v59, %v526_v58 }
  0x22   :  { %1295 = vmatprep.subr.bf16.mxu1 %v1294_v43  ;;  %v510_v61 = vld [vmem:[#allocation2 + $0x50] sm:$0xff]  ;;  %v559_v63 = vld [vmem:[#allocation2 + $0x1d8] sm:$0xff]  ;;  %v528_v3 = vld [vmem:[#allocation2 + $0xe0] sm:$0xff]  ;;  %v1300_v6 = vpack.c.bf16 %v541_v56, %v540_v55 }
  0x23   :  { %v542_v0 = vld [vmem:[#allocation2 + $0x150] sm:$0xff]  ;;  %v543_v1 = vld [vmem:[#allocation2 + $0x158] sm:$0xff]  ;;  %1265 = vmatpush3.bf16.msra.mxu0 %v1264_v48  ;;  %v529_v4 = vld [vmem:[#allocation2 + $0xe8] sm:$0xff]  ;;  %v1302_v11 = vpack.c.bf16 %v559_v63, %v558_v60  ;;  %v1272_v18 = vpack.c.bf16 %v511_v62, %v510_v61 }
  0x24   :  { %v1498_v5 = vld [vmem:[#allocation2 + $0x60] sm:$0xff]  ;;  %1267 = vmatprep.subr.bf16.mxu0 %v1266_v53  ;;  %v1500_v8 = vld [vmem:[#allocation2 + $0x68] sm:$0xff]  ;;  %v1506_v14 = vld [vmem:[#allocation2 + $0xf0] sm:$0xff]  ;;  %v1304_v19 = vpack.c.bf16 %v543_v1, %v542_v0  ;;  %v1274_v23 = vpack.c.bf16 %v529_v4, %v528_v3 }
  0x25   :  { %1297 = vmatpush3.bf16.msra.mxu1 %v1296_v52  ;;  %v560_v9 = vld [vmem:[#allocation2 + $0x1e0] sm:$0xff]  ;;  %v561_v10 = vld [vmem:[#allocation2 + $0x1e8] sm:$0xff]  ;;  %v1508_v15 = vld [vmem:[#allocation2 + $0xf8] sm:$0xff]  ;;  %v1276_v24 = vpack.c.bf16 %v1500_v8, %v1498_v5 }
  0x26   :  { %1299 = vmatprep.subr.bf16.mxu1 %v1298_v57  ;;  %v1502_v12 = vld [vmem:[#allocation2 + $0x160] sm:$0xff]  ;;  %v1504_v13 = vld [vmem:[#allocation2 + $0x168] sm:$0xff]  ;;  %v1510_v16 = vld [vmem:[#allocation2 + $0x70] sm:$0xff]  ;;  %v1306_v25 = vpack.c.bf16 %v561_v10, %v560_v9  ;;  %v1278_v31 = vpack.c.bf16 %v1508_v15, %v1506_v14 }
  0x27   :  { %v1512_v17 = vld [vmem:[#allocation2 + $0x78] sm:$0xff]  ;;  %1269 = vmatpush3.bf16.msra.mxu0 %v1268_v2  ;;  %v1514_v20 = vld [vmem:[#allocation2 + $0x1f0] sm:$0xff]  ;;  %v1533_v27 = vld [vmem:[%s2314_s0 + $0x50] sm:$0xff]  ;;  %v1308_v30 = vpack.c.bf16 %v1504_v13, %v1502_v12 }
  0x28   :  { %v1516_v21 = vld [vmem:[#allocation2 + $0x1f8] sm:$0xff]  ;;  %v1521_v22 = vld [vmem:[%s2314_s0] sm:$0xff]  ;;  %1271 = vmatprep.subr.bf16.mxu0 %v1270_v7  ;;  %v1538_v28 = vld [vmem:[%s2314_s0 + $0x78] sm:$0xff]  ;;  %v120_v36 = vunpack.c.h.bf16 %v1533_v27  ;;  %v1280_v37 = vpack.c.bf16 %v1512_v17, %v1510_v16  ;;  %v119_v61 = vunpack.c.l.bf16 %v1533_v27 }
  0x29   :  { %1301 = vmatpush3.bf16.msra.mxu1 %v1300_v6  ;;  %v1528_v26 = vld [vmem:[%s2314_s0 + $0x28] sm:$0xff]  ;;  %v100_v29 = vunpack.c.h.bf16 %v1521_v22  ;;  %v1548_v32 = vld [vmem:[%s2314_s0 + $0xa0] sm:$0xff]  ;;  %v1558_v34 = vld [vmem:[%s2314_s0 + $0xf0] sm:$0x11]  ;;  %v1310_v38 = vpack.c.bf16 %v1516_v21, %v1514_v20  ;;  %v130_v42 = vunpack.c.h.bf16 %v1538_v28  ;;  %v99_v56 = vunpack.c.l.bf16 %v1521_v22 }
  0x2a   :  { %1303 = vmatprep.subr.bf16.mxu1 %v1302_v11  ;;  %v1553_v33 = vld [vmem:[%s2314_s0 + $0xc8] sm:$0xff]  ;;  %v110_v35 = vunpack.c.h.bf16 %v1528_v26  ;;  %v64_v39 = vld [vmem:[%s2314_s0 + $0x118] sm:$0xff]  ;;  %v69_v40 = vld [vmem:[%s2314_s0 + $0x140] sm:$0xff]  ;;  %v160_v43 = vunpack.c.h.bf16 %v1558_v34  ;;  %v140_v52 = vunpack.c.h.bf16 %v1548_v32  ;;  %v109_v57 = vunpack.c.l.bf16 %v1528_v26 }
  0x2b   :  { %v1575_v41 = vld [vmem:[%s2314_s0 + $0x168] sm:$0xff]  ;;  %1273 = vmatpush3.bf16.msra.mxu0 %v1272_v18  ;;  %v1582_v44 = vld [vmem:[%s2314_s0 + $0x190] sm:$0xff]  ;;  %v1587_v45 = vld [vmem:[%s2314_s0 + $0x1b8] sm:$0xff]  ;;  %v170_v47 = vunpack.c.h.bf16 %v64_v39  ;;  %v180_v48 = vunpack.c.h.bf16 %v69_v40  ;;  %v150_v53 = vunpack.c.h.bf16 %v1553_v33  ;;  %v169_v5 = vunpack.c.l.bf16 %v64_v39 }
  0x2c   :  { %v1592_v46 = vld [vmem:[%s2314_s0 + $0x1e0] sm:$0xff]  ;;  %v190_v49 = vunpack.c.h.bf16 %v1575_v41  ;;  %v253_v50 = vadd.f32 %v110_v35, %v100_v29  ;;  %1275 = vmatprep.subr.bf16.mxu0 %v1274_v23  ;;  %v94_v51 = vld [vmem:[%s2314_s0 + $0x208] sm:$0x11]  ;;  %v200_v58 = vunpack.c.h.bf16 %v1582_v44  ;;  %v210_v62 = vunpack.c.h.bf16 %v1587_v45  ;;  %v580_v6 = vld [vmem:[#allocation2 + $0x280] sm:$0xff] }
  0x2d   :  { %1305 = vmatpush3.bf16.msra.mxu1 %v1304_v19  ;;  %v546_v54 = vld [vmem:[#allocation2 + $0x170] sm:$0xff]  ;;  %v547_v55 = vld [vmem:[#allocation2 + $0x178] sm:$0xff]  ;;  %v383_v60 = vadd.f32 %v180_v48, %v170_v47  ;;  %v220_v63 = vunpack.c.h.bf16 %v1592_v46  ;;  %v230_v0 = vunpack.c.h.bf16 %v94_v51  ;;  %v258_v1 = vsel %vm244_vm0, %v160_v43, 0.0  ;;  %v581_v7 = vld [vmem:[#allocation2 + $0x288] sm:$0xff] }
  0x2e   :  { %1307 = vmatprep.subr.bf16.mxu1 %v1306_v25  ;;  %v254_v59 = vadd.f32 %v253_v50, %v120_v36  ;;  %v1312_v4 = vpack.c.bf16 %v547_v55, %v546_v54  ;;  %v129_v8 = vunpack.c.l.bf16 %v1538_v28  ;;  %v139_v9 = vunpack.c.l.bf16 %v1548_v32  ;;  %v1622_v25 = vld [vmem:[%s2314_s0 + $0x30] sm:$0xff]  ;;  %v1641_v36 = vld [vmem:[%s2314_s0 + $0x58] sm:$0xff] }
  0x2f   :  { %1277 = vmatpush3.bf16.msra.mxu0 %v1276_v24  ;;  %v384_v3 = vadd.f32 %v383_v60, %v190_v49  ;;  %v179_v10 = vunpack.c.l.bf16 %v69_v40  ;;  %v189_v11 = vunpack.c.l.bf16 %v1575_v41  ;;  %v159_v14 = vunpack.c.l.bf16 %v1558_v34  ;;  %v1617_v24 = vld [vmem:[%s2314_s0 + $0x8] sm:$0xff]  ;;  %v1656_v41 = vld [vmem:[%s2314_s0 + $0x170] sm:$0xff] }
  0x30   :  { %v255_v2 = vadd.f32 %v254_v59, %v130_v42  ;;  %1279 = vmatprep.subr.bf16.mxu0 %v1278_v31  ;;  %v229_v15 = vunpack.c.l.bf16 %v94_v51  ;;  %v199_v16 = vunpack.c.l.bf16 %v1582_v44  ;;  %v239_v17 = vadd.f32 %v109_v57, %v99_v56  ;;  %v1634_v31 = vld [vmem:[%s2314_s0 + $0x148] sm:$0xff]  ;;  %v1670_v51 = vld [vmem:[%s2314_s0 + $0x198] sm:$0xff]  ;;  %v1677_v56 = vld [vmem:[%s2314_s0 + $0x1c0] sm:$0xff] }
  0x31   :  { %1309 = vmatpush3.bf16.msra.mxu1 %v1308_v30  ;;  %v385_v13 = vadd.f32 %v384_v3, %v200_v58  ;;  %v370_v18 = vadd.f32 %v179_v10, %v169_v5  ;;  %v1314_v19 = vpack.c.bf16 %v581_v7, %v580_v6  ;;  %v388_v22 = vsel %vm244_vm0, %v230_v0, 0.0  ;;  %v1629_v30 = vld [vmem:[%s2314_s0 + $0x120] sm:$0xff]  ;;  %v1651_v40 = vld [vmem:[%s2314_s0 + $0xa8] sm:$0xff] }
  0x32   :  { %1311 = vmatprep.subr.bf16.mxu1 %v1310_v38  ;;  %v256_v12 = vadd.f32 %v255_v2, %v140_v52  ;;  %v149_v23 = vunpack.c.l.bf16 %v1553_v33  ;;  %v209_v26 = vunpack.c.l.bf16 %v1587_v45  ;;  %v219_v27 = vunpack.c.l.bf16 %v1592_v46  ;;  %v1663_v46 = vld [vmem:[%s2314_s0 + $0xf8] sm:$0x11]  ;;  %v1690_v2 = vld [vmem:[%s2314_s0 + $0xd0] sm:$0xff]  ;;  %v1696_v7 = vld [vmem:[%s2314_s0 + $0x1e8] sm:$0xff] }
  0x33   :  { %1281 = vmatpush3.bf16.msra.mxu0 %v1280_v37  ;;  %v386_v21 = vadd.f32 %v385_v13, %v210_v62  ;;  %v240_v28 = vadd.f32 %v239_v17, %v119_v61  ;;  %v371_v29 = vadd.f32 %v370_v18, %v189_v11  ;;  %v245_v34 = vsel %vm244_vm0, %v159_v14, 0.0  ;;  %v1646_v37 = vld [vmem:[%s2314_s0 + $0x80] sm:$0xff]  ;;  %v1684_v61 = vld [vmem:[%s2314_s0 + $0x210] sm:$0x11] }
  0x34   :  { %v257_v20 = vadd.f32 %v256_v12, %v150_v53  ;;  %1315 = vmatprep.subr.bf16.mxu0 %v1314_v19  ;;  %v375_v35 = vsel %vm244_vm0, %v229_v15, 0.0  ;;  %v102_v42 = vunpack.c.h.bf16 %v1617_v24  ;;  %v112_v43 = vunpack.c.h.bf16 %v1622_v25 }
  0x35   :  { %1313 = vmatpush3.bf16.msra.mxu1 %v1312_v4  ;;  %v387_v33 = vadd.f32 %v386_v21, %v220_v63  ;;  %v241_v38 = vadd.f32 %v240_v28, %v129_v8  ;;  %v372_v39 = vadd.f32 %v371_v29, %v199_v16  ;;  %v172_v47 = vunpack.c.h.bf16 %v1629_v30 }
  0x36   :  { %v259_v32 = vadd.f32 %v258_v1, %v257_v20  ;;  %v182_v48 = vunpack.c.h.bf16 %v1634_v31  ;;  %v122_v52 = vunpack.c.h.bf16 %v1641_v36  ;;  %v132_v53 = vunpack.c.h.bf16 %v1646_v37 }
  0x37   :  { %v389_v45 = vadd.f32 %v388_v22, %v387_v33  ;;  %v242_v49 = vadd.f32 %v241_v38, %v139_v9  ;;  %v373_v50 = vadd.f32 %v372_v39, %v209_v26  ;;  %v142_v57 = vunpack.c.h.bf16 %v1651_v40  ;;  %v1702_v22 = vld [vmem:[#allocation2 + $0x200] sm:$0xff] }
  0x38   :  { %v260_v44 = vrot.slane %v259_v32, 4  ;;  %v192_v58 = vunpack.c.h.bf16 %v1656_v41  ;;  %v162_v62 = vunpack.c.h.bf16 %v1663_v46  ;;  %v279_v63 = vadd.f32 %v112_v43, %v102_v42 }
  0x39   :  { %v390_v55 = vrot.slane %v389_v45, 4  ;;  %v243_v59 = vadd.f32 %v242_v49, %v149_v23  ;;  %v374_v60 = vadd.f32 %v373_v50, %v219_v27  ;;  %v202_v3 = vunpack.c.h.bf16 %v1670_v51  ;;  %v1704_v23 = vld [vmem:[#allocation2 + $0x208] sm:$0xff] }
  0x3a   :  { %v261_v54 = vadd.f32 %v260_v44, %v259_v32  ;;  %v409_v4 = vadd.f32 %v182_v48, %v172_v47  ;;  %v212_v8 = vunpack.c.h.bf16 %v1677_v56  ;;  %v280_v9 = vadd.f32 %v279_v63, %v122_v52 }
  0x3b   :  { %v391_v1 = vadd.f32 %v390_v55, %v389_v45  ;;  %v246_v5 = vadd.f32 %v245_v34, %v243_v59  ;;  %v376_v6 = vadd.f32 %v375_v35, %v374_v60  ;;  %v232_v12 = vunpack.c.h.bf16 %v1684_v61 }
  0x3c   :  { %v262_v0 = vrot.slane %v261_v54, 2  ;;  %v410_v13 = vadd.f32 %v409_v4, %v192_v58  ;;  %v152_v16 = vunpack.c.h.bf16 %v1690_v2  ;;  %v281_v17 = vadd.f32 %v280_v9, %v132_v53 }
  0x3d   :  { %v392_v11 = vrot.slane %v391_v1, 2  ;;  %v247_v14 = vrot.slane %v246_v5, 4  ;;  %v377_v15 = vrot.slane %v376_v6, 4  ;;  %v222_v20 = vunpack.c.h.bf16 %v1696_v7 }
  0x3e   :  { %v263_v10 = vadd.f32 %v262_v0, %v261_v54  ;;  %v411_v21 = vadd.f32 %v410_v13, %v202_v3  ;;  %v282_v28 = vadd.f32 %v281_v17, %v142_v57  ;;  %v284_v29 = vsel %vm244_vm0, %v162_v62, 0.0  ;;  %v613_v3 = vld [vmem:[#allocation2 + $0x388] sm:$0xff] }
  0x3f   :  { %v393_v19 = vadd.f32 %v392_v11, %v391_v1  ;;  %v248_v26 = vadd.f32 %v247_v14, %v246_v5  ;;  %v378_v27 = vadd.f32 %v377_v15, %v376_v6  ;;  %v414_v35 = vsel %vm244_vm0, %v232_v12, 0.0  ;;  %v612_v1 = vld [vmem:[#allocation2 + $0x380] sm:$0xff]  ;;  %v566_v12 = vld [vmem:[#allocation2 + $0x210] sm:$0xff] }
  0x40   :  { %v264_v18 = vrot.slane %v263_v10, 1  ;;  %v412_v34 = vadd.f32 %v411_v21, %v212_v8  ;;  %v283_v42 = vadd.f32 %v282_v28, %v152_v16  ;;  %v1316_v43 = vpack.c.bf16 %v1704_v23, %v1702_v22  ;;  %v583_v8 = vld [vmem:[#allocation2 + $0x298] sm:$0xff]  ;;  %v1723_v15 = vld [vmem:[#allocation2 + $0x300] sm:$0xff]  ;;  %v1725_v16 = vld [vmem:[#allocation2 + $0x308] sm:$0xff] }
  0x41   :  { %v394_v33 = vrot.slane %v393_v19, 1  ;;  %v249_v38 = vrot.slane %v248_v26, 2  ;;  %v379_v39 = vrot.slane %v378_v27, 2  ;;  %v101_v47 = vunpack.c.l.bf16 %v1617_v24  ;;  %v584_v21 = vld [vmem:[#allocation2 + $0x2a0] sm:$0xff]  ;;  %v585_v22 = vld [vmem:[#allocation2 + $0x2a8] sm:$0xff] }
  0x42   :  { %v265_v32 = vadd.f32 %v264_v18, %v263_v10  ;;  %v413_v45 = vadd.f32 %v412_v34, %v222_v20  ;;  %v111_v48 = vunpack.c.l.bf16 %v1622_v25  ;;  %v285_v52 = vadd.f32 %v284_v29, %v283_v42  ;;  %v1728_v20 = vld [vmem:[#allocation2 + $0x390] sm:$0xff]  ;;  %v1732_v23 = vld [vmem:[#allocation2 + $0x220] sm:$0xff] }
  0x43   :  { %v395_v44 = vadd.f32 %v394_v33, %v393_v19  ;;  %v250_v49 = vadd.f32 %v249_v38, %v248_v26  ;;  %v380_v50 = vadd.f32 %v379_v39, %v378_v27  ;;  %v121_v53 = vunpack.c.l.bf16 %v1641_v36  ;;  %v1739_v33 = vld [vmem:[#allocation2 + $0x228] sm:$0xff]  ;;  %v1741_v34 = vld [vmem:[#allocation2 + $0x2b0] sm:$0xff] }
  0x44   :  { %v415_v55 = vadd.f32 %v414_v35, %v413_v45  ;;  %v171_v57 = vunpack.c.l.bf16 %v1629_v30  ;;  %v181_v58 = vunpack.c.l.bf16 %v1634_v31  ;;  %v286_v62 = vrot.slane %v285_v52, 4  ;;  %v582_v31 = vld [vmem:[#allocation2 + $0x290] sm:$0xff]  ;;  %v1746_v35 = vld [vmem:[%s2314_s0 + $0x10] sm:$0xff] }
  0x45   :  { %v689_v54 = vsel %vm687_vm1, %v395_v44, %v265_v32  ;;  %v251_v59 = vrot.slane %v250_v49, 1  ;;  %v381_v60 = vrot.slane %v380_v50, 1  ;;  %v131_v24 = vunpack.c.l.bf16 %v1646_v37  ;;  %v1735_v32 = vld [vmem:[#allocation2 + $0x310] sm:$0xff]  ;;  %v1752_v44 = vld [vmem:[#allocation2 + $0x3a8] sm:$0xff]  ;;  %v1754_v45 = vld [vmem:[#allocation2 + $0x320] sm:$0xff] }
  0x46   :  { %772 = vmatprep.mubr.f32.mxu0 %v689_v54  ;;  %v416_v63 = vrot.slane %v415_v55, 4  ;;  %v141_v25 = vunpack.c.l.bf16 %v1651_v40  ;;  %v161_v0 = vunpack.c.l.bf16 %v1663_v46  ;;  %v191_v36 = vunpack.c.l.bf16 %v1656_v41  ;;  %v567_v40 = vld [vmem:[#allocation2 + $0x218] sm:$0xff] }
  0x47   :  { %v252_v4 = vadd.f32 %v251_v59, %v250_v49  ;;  %v382_v5 = vadd.f32 %v381_v60, %v380_v50  ;;  %v287_v30 = vadd.f32 %v286_v62, %v285_v52  ;;  %v266_v6 = vadd.f32 %v111_v48, %v101_v47  ;;  %v1756_v47 = vld [vmem:[#allocation2 + $0x328] sm:$0xff]  ;;  %v1758_v48 = vld [vmem:[#allocation2 + $0x2b8] sm:$0xff]  ;;  %v1760_v49 = vld [vmem:[#allocation2 + $0x230] sm:$0xff] }
  0x48   :  { %v417_v9 = vadd.f32 %v416_v63, %v415_v55  ;;  %v201_v10 = vunpack.c.l.bf16 %v1670_v51  ;;  %v231_v37 = vunpack.c.l.bf16 %v1684_v61  ;;  %v396_v11 = vadd.f32 %v181_v58, %v171_v57  ;;  %v1730_v61 = vld [vmem:[#allocation2 + $0x398] sm:$0xff]  ;;  %v1765_v55 = vld [vmem:[#allocation2 + $0x3b0] sm:$0xff]  ;;  %v1775_v63 = vld [vmem:[#allocation2 + $0x2c0] sm:$0xff] }
  0x49   :  { %v688_v46 = vsel %vm687_vm1, %v382_v5, %v252_v4  ;;  %v288_v13 = vrot.slane %v287_v30, 2  ;;  %v267_v41 = vadd.f32 %v266_v6, %v121_v53  ;;  %v1346_v14 = vpack.c.bf16 %v613_v3, %v612_v1  ;;  %v1762_v50 = vld [vmem:[#allocation2 + $0x238] sm:$0xff]  ;;  %v1769_v58 = vld [vmem:[#allocation2 + $0x330] sm:$0xff]  ;;  %v1783_v1 = vld [vmem:[#allocation2 + $0x3c0] sm:$0xff] }
  0x4a   :  { %773 = vmatmul.mubr.f32.vlgmr.msra.gmra.mrb[0].mxu0 %v688_v46  ;;  %v418_v17 = vrot.slane %v417_v9, 2  ;;  %v211_v18 = vunpack.c.l.bf16 %v1677_v56  ;;  %v397_v19 = vadd.f32 %v396_v11, %v191_v36  ;;  %v1318_v51 = vpack.c.bf16 %v583_v8, %v582_v31  ;;  %v1737_v56 = vld [vmem:[#allocation2 + $0x318] sm:$0xff]  ;;  %v1781_v36 = vld [vmem:[#allocation2 + $0x248] sm:$0xff]  ;;  %2332 = vst [vmem:[#allocation8_spill] sm:$0xff] %v1783_v1  ;;  %v1792_v8 = vld [vmem:[#allocation2 + $0x340] sm:$0xff] }
  0x4b   :  { %v289_v26 = vadd.f32 %v288_v13, %v287_v30  ;;  %1317 = vmatpush3.bf16.msra.mxu0 %v1316_v43  ;;  %v151_v27 = vunpack.c.l.bf16 %v1690_v2  ;;  %v268_v28 = vadd.f32 %v267_v41, %v131_v24  ;;  %1347 = vmatprep.subr.bf16.mxu1 %v1346_v14  ;;  %v1320_v29 = vpack.c.bf16 %v567_v40, %v566_v12  ;;  %v1750_v43 = vld [vmem:[#allocation2 + $0x3a0] sm:$0xff]  ;;  %v1767_v57 = vld [vmem:[#allocation2 + $0x3b8] sm:$0xff]  ;;  %v1785_v3 = vld [vmem:[#allocation2 + $0x3c8] sm:$0xff] }
  0x4c   :  { %v419_v38 = vadd.f32 %v418_v17, %v417_v9  ;;  %v221_v39 = vunpack.c.l.bf16 %v1696_v7  ;;  %v271_v2 = vsel %vm244_vm0, %v161_v0, 0.0  ;;  %v398_v42 = vadd.f32 %v397_v19, %v201_v10  ;;  %1319 = vmatprep.subr.bf16.mxu0 %v1318_v51  ;;  %v1771_v59 = vld [vmem:[#allocation2 + $0x338] sm:$0xff]  ;;  %v1777_v0 = vld [vmem:[#allocation2 + $0x2c8] sm:$0xff]  ;;  %2333 = vst [vmem:[#allocation9_spill] sm:$0xff] %v1785_v3  ;;  %2334 = vst [vmem:[#allocation10_spill] sm:$0xff] %v1792_v8 }
  0x4d   :  { %v290_v52 = vrot.slane %v289_v26, 1  ;;  %v269_v7 = vadd.f32 %v268_v28, %v141_v25  ;;  %v401_v53 = vsel %vm244_vm0, %v231_v37, 0.0  ;;  %v1322_v54 = vpack.c.bf16 %v585_v22, %v584_v21  ;;  %v1779_v25 = vld [vmem:[#allocation2 + $0x240] sm:$0xff]  ;;  %v1794_v9 = vld [vmem:[#allocation2 + $0x348] sm:$0xff]  ;;  %v1796_v10 = vld [vmem:[#allocation2 + $0x2d0] sm:$0xff] }
  0x4e   :  { %v420_v60 = vrot.slane %v419_v38, 1  ;;  %v399_v62 = vadd.f32 %v398_v42, %v211_v18  ;;  %v1324_v31 = vpack.c.bf16 %v1739_v33, %v1732_v23  ;;  %2335 = vst [vmem:[#allocation11_spill] sm:$0xff] %v1794_v9  ;;  %v1798_v37 = vld [vmem:[#allocation2 + $0x2d8] sm:$0xff]  ;;  %v1800_v11 = vld [vmem:[#allocation2 + $0x250] sm:$0xff]  ;;  %v1326_v41 = vpack.c.bf16 %v1758_v48, %v1741_v34  ;;  %v1816_v51 = vld [vmem:[#allocation2 + $0x2e0] sm:$0xff] }
  0x4f   :  { %v291_v5 = vadd.f32 %v290_v52, %v289_v26  ;;  %v270_v30 = vadd.f32 %v269_v7, %v151_v27  ;;  %1321 = vmatpush3.bf16.msra.mxu0 %v1320_v29  ;;  %v1802_v12 = vld [vmem:[#allocation2 + $0x258] sm:$0xff]  ;;  %v1808_v14 = vld [vmem:[#allocation2 + $0x3d0] sm:$0xff]  ;;  %v1818_v21 = vld [vmem:[#allocation2 + $0x2e8] sm:$0xff]  ;;  %v1328_v27 = vpack.c.bf16 %v1762_v50, %v1760_v49  ;;  %v1330_v52 = vpack.c.bf16 %v1777_v0, %v1775_v63 }
  0x50   :  { %v421_v40 = vadd.f32 %v420_v60, %v419_v38  ;;  %v400_v46 = vadd.f32 %v399_v62, %v221_v39  ;;  %1323 = vmatprep.subr.bf16.mxu0 %v1322_v54  ;;  %2336 = vst [vmem:[#allocation12_spill] sm:$0xff] %v1808_v14  ;;  %v1810_v17 = vld [vmem:[#allocation2 + $0x3d8] sm:$0xff]  ;;  %v1812_v18 = vld [vmem:[#allocation2 + $0x350] sm:$0xff]  ;;  %v1826_v28 = vld [vmem:[#allocation2 + $0x260] sm:$0xff]  ;;  %v1332_v7 = vpack.c.bf16 %v1781_v36, %v1779_v25 }
  0x51   :  { %2337 = vst [vmem:[#allocation13_spill] sm:$0xff] %v1810_v17  ;;  %2338 = vst [vmem:[#allocation14_spill] sm:$0xff] %v1812_v18  ;;  %v1814_v19 = vld [vmem:[#allocation2 + $0x358] sm:$0xff]  ;;  %v272_v22 = vadd.f32 %v271_v2, %v270_v30  ;;  %v1828_v29 = vld [vmem:[#allocation2 + $0x268] sm:$0xff]  ;;  %v1334_v0 = vpack.c.bf16 %v1798_v37, %v1796_v10  ;;  %v1336_v25 = vpack.c.bf16 %v1802_v12, %v1800_v11 }
  0x52   :  { %2339 = vst [vmem:[#allocation15_spill] sm:$0xff] %v1814_v19  ;;  %v1830_v33 = vld [vmem:[#allocation2 + $0x3e0] sm:$0xff]  ;;  %v691_v34 = vsel %vm687_vm1, %v421_v40, %v291_v5  ;;  %v402_v38 = vadd.f32 %v401_v53, %v400_v46  ;;  %v1837_v42 = vld [vmem:[#allocation2 + $0x3e8] sm:$0xff]  ;;  %v1849_v54 = vld [vmem:[#allocation2 + $0x2f0] sm:$0xff] }
  0x53   :  { %2340 = vst [vmem:[#allocation16_spill] sm:$0xff] %v1830_v33  ;;  %2341 = vst [vmem:[#allocation17_spill] sm:$0xff] %v1837_v42  ;;  %v1839_v48 = vld [vmem:[#allocation2 + $0x360] sm:$0xff]  ;;  %v1841_v49 = vld [vmem:[#allocation2 + $0x368] sm:$0xff]  ;;  %842 = vmatprep.mubr.f32.mxu1 %v691_v34  ;;  %v273_v50 = vrot.slane %v272_v22, 4  ;;  %1325 = vmatpush3.bf16.msra.mxu0 %v1324_v31 }
  0x54   :  { %2342 = vst [vmem:[#allocation18_spill] sm:$0xff] %v1839_v48  ;;  %2343 = vst [vmem:[#allocation19_spill] sm:$0xff] %v1841_v49  ;;  %v1851_v60 = vld [vmem:[#allocation2 + $0x2f8] sm:$0xff]  ;;  %v1856_v62 = vld [vmem:[%s2314_s0 + $0x38] sm:$0xff]  ;;  %v403_v5 = vrot.slane %v402_v38, 4  ;;  %1327 = vmatprep.subr.bf16.mxu0 %v1326_v41 }
  0x55   :  { %v1864_v36 = vld [vmem:[#allocation2 + $0x270] sm:$0xff]  ;;  %v1866_v30 = vld [vmem:[#allocation2 + $0x278] sm:$0xff]  ;;  %v274_v40 = vadd.f32 %v273_v50, %v272_v22  ;;  %v1889_v11 = vld [vmem:[%s2314_s0 + $0x150] sm:$0xff] }
  0x56   :  { %v1868_v31 = vld [vmem:[#allocation2 + $0x3f0] sm:$0xff]  ;;  %v1884_v37 = vld [vmem:[%s2314_s0 + $0x128] sm:$0xff]  ;;  %v404_v12 = vadd.f32 %v403_v5, %v402_v38  ;;  %v1905_v63 = vld [vmem:[%s2314_s0 + $0x178] sm:$0xff]  ;;  %v114_v38 = vunpack.c.h.bf16 %v1856_v62  ;;  %v184_v50 = vunpack.c.h.bf16 %v1889_v11 }
  0x57   :  { %2344 = vst [vmem:[#allocation20_spill] sm:$0xff] %v1868_v31  ;;  %v1879_v10 = vld [vmem:[%s2314_s0 + $0x60] sm:$0xff]  ;;  %v1895_v41 = vld [vmem:[#allocation2 + $0x3f8] sm:$0xff]  ;;  %v275_v5 = vrot.slane %v274_v40, 2  ;;  %1329 = vmatpush3.bf16.msra.mxu0 %v1328_v27  ;;  %v1922_v26 = vld [vmem:[%s2314_s0 + $0xb0] sm:$0xff]  ;;  %v174_v13 = vunpack.c.h.bf16 %v1884_v37  ;;  %v194_v4 = vunpack.c.h.bf16 %v1905_v63  ;;  %v2346_v31 = vunpack.c.h.bf16 %v1746_v35 }
  0x58   :  { %2345 = vst [vmem:[#allocation21_spill] sm:$0xff] %v1895_v41  ;;  %v1900_v46 = vld [vmem:[%s2314_s0 + $0x100] sm:$0x11]  ;;  %v1917_v39 = vld [vmem:[%s2314_s0 + $0x88] sm:$0xff]  ;;  %v405_v27 = vrot.slane %v404_v12, 2  ;;  %1331 = vmatprep.subr.bf16.mxu0 %v1330_v52  ;;  %v124_v23 = vunpack.c.h.bf16 %v1879_v10  ;;  %v1942_v6 = vld [vmem:[%s2314_s0 + $0xd8] sm:$0xff]  ;;  %v144_v52 = vunpack.c.h.bf16 %v1922_v26 }
  0x59   :  { %v1927_v53 = vld [vmem:[%s2314_s0 + $0x1a0] sm:$0xff]  ;;  %v1932_v2 = vld [vmem:[%s2314_s0 + $0x218] sm:$0x11]  ;;  %v276_v22 = vadd.f32 %v275_v5, %v274_v40  ;;  %v1947_v24 = vld [vmem:[%s2314_s0 + $0x1c8] sm:$0xff]  ;;  %v164_v34 = vunpack.c.h.bf16 %v1900_v46  ;;  %v134_v5 = vunpack.c.h.bf16 %v1917_v39  ;;  %v305_v41 = vadd.f32 %v114_v38, %v2346_v31 }
  0x5a   :  { %v406_v48 = vadd.f32 %v405_v27, %v404_v12  ;;  %v1954_v40 = vld [vmem:[%s2314_s0 + $0x1f0] sm:$0xff]  ;;  %v204_v33 = vunpack.c.h.bf16 %v1927_v53  ;;  %v234_v42 = vunpack.c.h.bf16 %v1932_v2  ;;  %v435_v18 = vadd.f32 %v184_v50, %v174_v13  ;;  %v1964_v17 = vld [vmem:[#allocation2 + $0x370] sm:$0xff]  ;;  %v1966_v8 = vld [vmem:[#allocation2 + $0x378] sm:$0xff] }
  0x5b   :  { %v277_v49 = vrot.slane %v276_v22, 1  ;;  %1333 = vmatpush3.bf16.msra.mxu0 %v1332_v7  ;;  %v154_v27 = vunpack.c.h.bf16 %v1942_v6  ;;  %v214_v19 = vunpack.c.h.bf16 %v1947_v24  ;;  %v306_v14 = vadd.f32 %v305_v41, %v124_v23 }
  0x5c   :  { %v407_v12 = vrot.slane %v406_v48, 1  ;;  %1335 = vmatprep.subr.bf16.mxu0 %v1334_v0  ;;  %v224_v31 = vunpack.c.h.bf16 %v1954_v40  ;;  %v310_v7 = vsel %vm244_vm0, %v164_v34, 0.0  ;;  %v436_v38 = vadd.f32 %v435_v18, %v194_v4  ;;  %v645_v34 = vld [vmem:[#allocation2 + $0x488] sm:$0xff] }
  0x5d   :  { %v278_v9 = vadd.f32 %v277_v49, %v276_v22  ;;  %v307_v3 = vadd.f32 %v306_v14, %v134_v5  ;;  %v103_v13 = vunpack.c.l.bf16 %v1746_v35  ;;  %v113_v0 = vunpack.c.l.bf16 %v1856_v62 }
  0x5e   :  { %v408_v1 = vadd.f32 %v407_v12, %v406_v48  ;;  %v437_v50 = vadd.f32 %v436_v38, %v204_v33  ;;  %v440_v23 = vsel %vm244_vm0, %v234_v42, 0.0  ;;  %v1376_v41 = vpack.c.bf16 %v1966_v8, %v1964_v17  ;;  %v2167_v8 = vld [vmem:[#allocation2 + $0x448] sm:$0xff]  ;;  %v2169_v17 = vld [vmem:[#allocation2 + $0x4d0] sm:$0xff] }
  0x5f   :  { %1337 = vmatpush3.bf16.msra.mxu0 %v1336_v25  ;;  %v173_v49 = vunpack.c.l.bf16 %v1884_v37  ;;  %v2347_v4 = vpack.c.bf16 %v1818_v21, %v1816_v51  ;;  %v308_v14 = vadd.f32 %v307_v3, %v144_v52  ;;  %v123_v35 = vunpack.c.l.bf16 %v1879_v10  ;;  %v644_v25 = vld [vmem:[#allocation2 + $0x480] sm:$0xff] }
  0x60   :  { %v690_v22 = vsel %vm687_vm1, %v408_v1, %v278_v9  ;;  %v183_v18 = vunpack.c.l.bf16 %v1889_v11  ;;  %v438_v33 = vadd.f32 %v437_v50, %v214_v19  ;;  %v133_v42 = vunpack.c.l.bf16 %v1917_v39  ;;  %v2027_v11 = vld [vmem:[%s2314_s0 + $0x158] sm:$0xff]  ;;  %v2058_v50 = vld [vmem:[%s2314_s0 + $0x180] sm:$0xff] }
  0x61   :  { %1339 = vmatprep.subr.bf16.mxu0 %v2347_v4  ;;  %843 = vmatmul.mubr.f32.vlgmr.msra.gmra.mrb[0].mxu1 %v690_v22  ;;  %v163_v48 = vunpack.c.l.bf16 %v1900_v46  ;;  %v193_v62 = vunpack.c.l.bf16 %v1905_v63  ;;  %v2348_v1 = vpack.c.bf16 %v1725_v16, %v1723_v15  ;;  %v309_v9 = vadd.f32 %v308_v14, %v154_v27  ;;  %v2036_v27 = vld [vmem:[%s2314_s0 + $0x90] sm:$0xff] }
  0x62   :  { %v143_v3 = vunpack.c.l.bf16 %v1922_v26  ;;  %v233_v51 = vunpack.c.l.bf16 %v1932_v2  ;;  %v292_v21 = vadd.f32 %v113_v0, %v103_v13  ;;  %v2349_v19 = vpack.c.bf16 %v1730_v61, %v1728_v20  ;;  %v2001_v26 = vld [vmem:[%s2314_s0 + $0x18] sm:$0xff]  ;;  %v2053_v0 = vld [vmem:[%s2314_s0 + $0xe0] sm:$0xff] }
  0x63   :  { %1349 = vmatpush3.bf16.msra.mxu1 %v2348_v1  ;;  %v2350_v39 = vpack.c.bf16 %v1828_v29, %v1826_v28  ;;  %v439_v63 = vadd.f32 %v438_v33, %v224_v31  ;;  %v153_v46 = vunpack.c.l.bf16 %v1942_v6  ;;  %v203_v15 = vunpack.c.l.bf16 %v1927_v53  ;;  %v2010_v6 = vld [vmem:[%s2314_s0 + $0x40] sm:$0xff]  ;;  %v2015_v53 = vld [vmem:[%s2314_s0 + $0x68] sm:$0xff]  ;;  %v2041_v31 = vld [vmem:[%s2314_s0 + $0xb8] sm:$0xff] }
  0x64   :  { %1351 = vmatprep.subr.bf16.mxu1 %v2349_v19  ;;  %v422_v16 = vadd.f32 %v183_v18, %v173_v49  ;;  %v2351_v2 = vpack.c.bf16 %v1851_v60, %v1849_v54  ;;  %v311_v20 = vadd.f32 %v310_v7, %v309_v9  ;;  %v213_v61 = vunpack.c.l.bf16 %v1947_v24  ;;  %v2022_v24 = vld [vmem:[%s2314_s0 + $0x130] sm:$0xff] }
  0x65   :  { %1341 = vmatpush3.bf16.msra.mxu0 %v2350_v39  ;;  %v293_v28 = vadd.f32 %v292_v21, %v123_v35  ;;  %v1378_v29 = vpack.c.bf16 %v645_v34, %v644_v25  ;;  %v441_v10 = vadd.f32 %v440_v23, %v439_v63  ;;  %v223_v37 = vunpack.c.l.bf16 %v1954_v40  ;;  %v2072_v35 = vld [vmem:[%s2314_s0 + $0x1a8] sm:$0xff]  ;;  %v2082_v25 = vld [vmem:[%s2314_s0 + $0x220] sm:$0x11]  ;;  %v2098_v63 = vld [vmem:[%s2314_s0 + $0x1f8] sm:$0xff] }
  0x66   :  { %1343 = vmatprep.subr.bf16.mxu0 %v2351_v2  ;;  %v297_v54 = vsel %vm244_vm0, %v163_v48, 0.0  ;;  %v423_v60 = vadd.f32 %v422_v16, %v193_v62  ;;  %v2352_v52 = vpack.c.bf16 %v1737_v56, %v1735_v32  ;;  %v312_v5 = vrot.slane %v311_v20, 4 }
  0x67   :  { %v294_v12 = vadd.f32 %v293_v28, %v133_v42  ;;  %v427_v40 = vsel %vm244_vm0, %v233_v51, 0.0  ;;  %v106_v7 = vunpack.c.h.bf16 %v2001_v26  ;;  %v2353_v32 = vpack.c.bf16 %v1752_v44, %v1750_v43 }
  0x68   :  { %1353 = vmatpush3.bf16.msra.mxu1 %v2352_v52  ;;  %v2354_v56 = vpack.c.bf16 %v1866_v30, %v1864_v36  ;;  %v442_v38 = vrot.slane %v441_v10, 4  ;;  %v424_v13 = vadd.f32 %v423_v60, %v203_v15  ;;  %v116_v23 = vunpack.c.h.bf16 %v2010_v6  ;;  %v2065_v36 = vld [vmem:[%s2314_s0 + $0x108] sm:$0x11] }
  0x69   :  { %1355 = vmatprep.subr.bf16.mxu1 %v2353_v32  ;;  %v126_v43 = vunpack.c.h.bf16 %v2015_v53  ;;  %v313_v44 = vadd.f32 %v312_v5, %v311_v20  ;;  %v295_v49 = vadd.f32 %v294_v12, %v143_v3  ;;  %v176_v30 = vunpack.c.h.bf16 %v2022_v24  ;;  %v2112_v32 = vld [vmem:[#allocation2 + $0x408] sm:$0xff] }
  0x6a   :  { %1345 = vmatpush3.bf16.msra.mxu0 %v2354_v56  ;;  %v186_v22 = vunpack.c.h.bf16 %v2027_v11  ;;  %v443_v4 = vadd.f32 %v442_v38, %v441_v10  ;;  %v425_v14 = vadd.f32 %v424_v13, %v213_v61  ;;  %v136_v18 = vunpack.c.h.bf16 %v2036_v27 }
  0x6b   :  { %1379 = vmatprep.subr.bf16.mxu0 %v1378_v29  ;;  %v146_v33 = vunpack.c.h.bf16 %v2041_v31  ;;  %v2355_v42 = vpack.c.bf16 %v1756_v47, %v1754_v45  ;;  %v314_v48 = vrot.slane %v313_v44, 2  ;;  %v296_v62 = vadd.f32 %v295_v49, %v153_v46  ;;  %v2092_v45 = vld [vmem:[%s2314_s0 + $0x1d0] sm:$0xff] }
  0x6c   :  { %v156_v34 = vunpack.c.h.bf16 %v2053_v0  ;;  %v196_v1 = vunpack.c.h.bf16 %v2058_v50  ;;  %v2356_v9 = vpack.c.bf16 %v1767_v57, %v1765_v55  ;;  %v444_v3 = vrot.slane %v443_v4, 2  ;;  %v2361_v49 = vld [vmem:[#allocation11_spill] sm:$0xff] }
  0x6d   :  { %1357 = vmatpush3.bf16.msra.mxu1 %v2355_v42  ;;  %v426_v51 = vadd.f32 %v425_v14, %v223_v37  ;;  %v166_v47 = vunpack.c.h.bf16 %v2065_v36  ;;  %v331_v21 = vadd.f32 %v116_v23, %v106_v7  ;;  %v315_v19 = vadd.f32 %v314_v48, %v313_v44  ;;  %v2358_v37 = vld [vmem:[#allocation9_spill] sm:$0xff]  ;;  %v2110_v7 = vld [vmem:[#allocation2 + $0x400] sm:$0xff] }
  0x6e   :  { %1359 = vmatprep.subr.bf16.mxu1 %v2356_v9  ;;  %v298_v39 = vadd.f32 %v297_v54, %v296_v62  ;;  %v206_v55 = vunpack.c.h.bf16 %v2072_v35  ;;  %v461_v57 = vadd.f32 %v186_v22, %v176_v30  ;;  %v445_v46 = vadd.f32 %v444_v3, %v443_v4  ;;  %v2359_v54 = vld [vmem:[#allocation8_spill] sm:$0xff]  ;;  %v2362_v30 = vld [vmem:[#allocation10_spill] sm:$0xff]  ;;  %v2364_v48 = vld [vmem:[#allocation13_spill] sm:$0xff] }
  0x6f   :  { %v428_v15 = vadd.f32 %v427_v40, %v426_v51  ;;  %v236_v16 = vunpack.c.h.bf16 %v2082_v25  ;;  %v332_v2 = vadd.f32 %v331_v21, %v126_v43  ;;  %v2357_v20 = vpack.c.bf16 %v1771_v59, %v1769_v58  ;;  %v2365_v62 = vld [vmem:[#allocation12_spill] sm:$0xff] }
  0x70   :  { %v316_v61 = vrot.slane %v315_v19, 1  ;;  %v299_v28 = vrot.slane %v298_v39, 4  ;;  %v216_v29 = vunpack.c.h.bf16 %v2092_v45  ;;  %v462_v10 = vadd.f32 %v461_v57, %v196_v1 }
  0x71   :  { %1361 = vmatpush3.bf16.msra.mxu1 %v2357_v20  ;;  %v2360_v60 = vpack.c.bf16 %v2358_v37, %v2359_v54  ;;  %v446_v52 = vrot.slane %v445_v46, 1  ;;  %v429_v5 = vrot.slane %v428_v15, 4  ;;  %v226_v12 = vunpack.c.h.bf16 %v2098_v63  ;;  %v647_v54 = vld [vmem:[#allocation2 + $0x498] sm:$0xff] }
  0x72   :  { %v333_v40 = vadd.f32 %v332_v2, %v136_v18  ;;  %v317_v58 = vadd.f32 %v316_v61, %v315_v19  ;;  %v300_v59 = vadd.f32 %v299_v28, %v298_v39  ;;  %v336_v56 = vsel %vm244_vm0, %v166_v47, 0.0  ;;  %v2370_v28 = vld [vmem:[#allocation17_spill] sm:$0xff] }
  0x73   :  { %1363 = vmatprep.subr.bf16.mxu1 %v2360_v60  ;;  %v463_v38 = vadd.f32 %v462_v10, %v206_v55  ;;  %v447_v13 = vadd.f32 %v446_v52, %v445_v46  ;;  %v430_v23 = vadd.f32 %v429_v5, %v428_v15  ;;  %v466_v44 = vsel %vm244_vm0, %v236_v16, 0.0  ;;  %v2367_v15 = vld [vmem:[#allocation15_spill] sm:$0xff]  ;;  %v2368_v16 = vld [vmem:[#allocation14_spill] sm:$0xff] }
  0x74   :  { %v334_v43 = vadd.f32 %v333_v40, %v146_v33  ;;  %v2363_v22 = vpack.c.bf16 %v2361_v49, %v2362_v30  ;;  %v301_v4 = vrot.slane %v300_v59, 2  ;;  %v1380_v18 = vpack.c.bf16 %v2112_v32, %v2110_v7  ;;  %v2373_v32 = vld [vmem:[#allocation19_spill] sm:$0xff]  ;;  %v2377_v49 = vld [vmem:[#allocation20_spill] sm:$0xff] }
  0x75   :  { %v464_v14 = vadd.f32 %v463_v38, %v216_v29  ;;  %v105_v42 = vunpack.c.l.bf16 %v2001_v26  ;;  %v2366_v1 = vpack.c.bf16 %v2364_v48, %v2365_v62  ;;  %v693_v9 = vsel %vm687_vm1, %v447_v13, %v317_v58  ;;  %v2374_v58 = vld [vmem:[#allocation18_spill] sm:$0xff] }
  0x76   :  { %1365 = vmatpush3.bf16.msra.mxu1 %v2363_v22  ;;  %v431_v33 = vrot.slane %v430_v23, 2  ;;  %v335_v3 = vadd.f32 %v334_v43, %v156_v34  ;;  %v115_v51 = vunpack.c.l.bf16 %v2010_v6  ;;  %912 = vmatprep.mubr.f32.mxu0 %v693_v9  ;;  %v302_v47 = vadd.f32 %v301_v4, %v300_v59  ;;  %v631_v43 = vld [vmem:[#allocation2 + $0x418] sm:$0xff]  ;;  %v633_v9 = vld [vmem:[#allocation2 + $0x428] sm:$0xff] }
  0x77   :  { %1367 = vmatprep.subr.bf16.mxu1 %v2366_v1  ;;  %v465_v21 = vadd.f32 %v464_v14, %v226_v12  ;;  %v175_v19 = vunpack.c.l.bf16 %v2022_v24  ;;  %v185_v39 = vunpack.c.l.bf16 %v2027_v11  ;;  %v125_v26 = vunpack.c.l.bf16 %v2015_v53  ;;  %v2371_v24 = vld [vmem:[#allocation16_spill] sm:$0xff] }
  0x78   :  { %v432_v55 = vadd.f32 %v431_v33, %v430_v23  ;;  %v337_v57 = vadd.f32 %v336_v56, %v335_v3  ;;  %v135_v46 = vunpack.c.l.bf16 %v2036_v27  ;;  %v2369_v2 = vpack.c.bf16 %v2367_v15, %v2368_v16  ;;  %v646_v27 = vld [vmem:[#allocation2 + $0x490] sm:$0xff]  ;;  %v648_v14 = vld [vmem:[#allocation2 + $0x4a0] sm:$0xff] }
  0x79   :  { %v303_v34 = vrot.slane %v302_v47, 1  ;;  %v467_v20 = vadd.f32 %v466_v44, %v465_v21  ;;  %v145_v6 = vunpack.c.l.bf16 %v2041_v31  ;;  %v195_v61 = vunpack.c.l.bf16 %v2058_v50  ;;  %v630_v23 = vld [vmem:[#allocation2 + $0x410] sm:$0xff]  ;;  %v632_v1 = vld [vmem:[#allocation2 + $0x420] sm:$0xff]  ;;  %v651_v21 = vld [vmem:[#allocation2 + $0x4b8] sm:$0xff] }
  0x7a   :  { %1369 = vmatpush3.bf16.msra.mxu1 %v2369_v2  ;;  %v2372_v29 = vpack.c.bf16 %v2370_v28, %v2371_v24  ;;  %v433_v11 = vrot.slane %v432_v55, 1  ;;  %v338_v10 = vrot.slane %v337_v57, 4  ;;  %v155_v53 = vunpack.c.l.bf16 %v2053_v0  ;;  %v2376_v44 = vld [vmem:[#allocation21_spill] sm:$0xff]  ;;  %v2165_v2 = vld [vmem:[#allocation2 + $0x440] sm:$0xff] }
  0x7b   :  { %v318_v37 = vadd.f32 %v115_v51, %v105_v42  ;;  %v304_v60 = vadd.f32 %v303_v34, %v302_v47  ;;  %v468_v52 = vrot.slane %v467_v20, 4  ;;  %v205_v5 = vunpack.c.l.bf16 %v2072_v35  ;;  %v649_v42 = vld [vmem:[#allocation2 + $0x4a8] sm:$0xff]  ;;  %v650_v47 = vld [vmem:[#allocation2 + $0x4b0] sm:$0xff] }
  0x7c   :  { %1371 = vmatprep.subr.bf16.mxu1 %v2372_v29  ;;  %v448_v12 = vadd.f32 %v185_v39, %v175_v19  ;;  %v434_v40 = vadd.f32 %v433_v11, %v432_v55  ;;  %v339_v31 = vadd.f32 %v338_v10, %v337_v57  ;;  %v165_v50 = vunpack.c.l.bf16 %v2065_v36  ;;  %v2152_v19 = vld [vmem:[#allocation2 + $0x430] sm:$0xff]  ;;  %v2158_v57 = vld [vmem:[#allocation2 + $0x438] sm:$0xff] }
  0x7d   :  { %v319_v7 = vadd.f32 %v318_v37, %v125_v26  ;;  %v2375_v59 = vpack.c.bf16 %v2373_v32, %v2374_v58  ;;  %v469_v56 = vadd.f32 %v468_v52, %v467_v20  ;;  %v215_v0 = vunpack.c.l.bf16 %v2092_v45  ;;  %v2160_v26 = vld [vmem:[#allocation2 + $0x4c0] sm:$0xff]  ;;  %v2171_v20 = vld [vmem:[#allocation2 + $0x4d8] sm:$0xff]  ;;  %v2183_v10 = vld [vmem:[#allocation2 + $0x450] sm:$0xff] }
  0x7e   :  { %v449_v38 = vadd.f32 %v448_v12, %v195_v61  ;;  %v1382_v13 = vpack.c.bf16 %v647_v54, %v646_v27  ;;  %v2378_v35 = vpack.c.bf16 %v2376_v44, %v2377_v49  ;;  %v692_v30 = vsel %vm687_vm1, %v434_v40, %v304_v60  ;;  %v2181_v61 = vld [vmem:[%s2314_s0 + $0x48] sm:$0xff]  ;;  %v2190_v37 = vld [vmem:[%s2314_s0 + $0x138] sm:$0xff]  ;;  %v2204_v12 = vld [vmem:[%s2314_s0 + $0x160] sm:$0xff] }
  0x7f   :  { %1373 = vmatpush3.bf16.msra.mxu1 %v2375_v59  ;;  %v340_v22 = vrot.slane %v339_v31, 2  ;;  %v235_v36 = vunpack.c.l.bf16 %v2082_v25  ;;  %v320_v4 = vadd.f32 %v319_v7, %v135_v46  ;;  %913 = vmatmul.mubr.f32.vlgmr.msra.gmra.mrb[2].mxu0 %v692_v30  ;;  %v470_v48 = vrot.slane %v469_v56, 2  ;;  %v2209_v40 = vld [vmem:[%s2314_s0 + $0x188] sm:$0xff]  ;;  %v2213_v7 = vld [vmem:[#allocation2 + $0x4e0] sm:$0xff]  ;;  %v2215_v32 = vld [vmem:[#allocation2 + $0x4e8] sm:$0xff] }
  0x80   :  { %1375 = vmatprep.subr.bf16.mxu1 %v2378_v35  ;;  %v225_v45 = vunpack.c.l.bf16 %v2098_v63  ;;  %v450_v62 = vadd.f32 %v449_v38, %v205_v5  ;;  %1381 = vmatpush3.bf16.msra.mxu0 %v1380_v18  ;;  %v1384_v51 = vpack.c.bf16 %v631_v43, %v630_v23  ;;  %v323_v39 = vsel %vm244_vm0, %v165_v50, 0.0  ;;  %v2162_v18 = vld [vmem:[#allocation2 + $0x4c8] sm:$0xff]  ;;  %v2199_v5 = vld [vmem:[%s2314_s0 + $0x70] sm:$0xff]  ;;  %v2236_v49 = vld [vmem:[%s2314_s0 + $0xc0] sm:$0xff] }
  0x81   :  { %v341_v33 = vadd.f32 %v340_v22, %v339_v31  ;;  %v321_v3 = vadd.f32 %v320_v4, %v145_v6  ;;  %v471_v25 = vadd.f32 %v470_v48, %v469_v56  ;;  %1383 = vmatprep.subr.bf16.mxu0 %v1382_v13  ;;  %v1386_v63 = vpack.c.bf16 %v649_v42, %v648_v14  ;;  %v2176_v6 = vld [vmem:[%s2314_s0 + $0x20] sm:$0xff]  ;;  %v2220_v58 = vld [vmem:[%s2314_s0 + $0x98] sm:$0xff]  ;;  %v2230_v23 = vld [vmem:[%s2314_s0 + $0x1b0] sm:$0xff] }
  0x82   :  { %v451_v55 = vadd.f32 %v450_v62, %v215_v0  ;;  %v453_v16 = vsel %vm244_vm0, %v235_v36, 0.0  ;;  %v1388_v29 = vpack.c.bf16 %v633_v9, %v632_v1  ;;  %v1390_v11 = vpack.c.bf16 %v651_v21, %v650_v47  ;;  %v2241_v35 = vld [vmem:[%s2314_s0 + $0xe8] sm:$0xff]  ;;  %v2246_v30 = vld [vmem:[%s2314_s0 + $0x110] sm:$0x11]  ;;  %v2264_v9 = vld [vmem:[%s2314_s0 + $0x200] sm:$0xff] }
  0x83   :  { %1377 = vmatpush3.bf16.msra.mxu1 %v1376_v41  ;;  %v342_v46 = vrot.slane %v341_v33, 1  ;;  %v322_v15 = vadd.f32 %v321_v3, %v155_v53  ;;  %v472_v41 = vrot.slane %v471_v25, 1  ;;  %v2185_v53 = vld [vmem:[#allocation2 + $0x458] sm:$0xff]  ;;  %v1392_v60 = vpack.c.bf16 %v2158_v57, %v2152_v19  ;;  %v641_v57 = vld [vmem:[#allocation2 + $0x468] sm:$0xff] }
  0x84   :  { %v452_v34 = vadd.f32 %v451_v55, %v225_v45  ;;  %1385 = vmatpush3.bf16.msra.mxu0 %v1384_v51  ;;  %v1394_v52 = vpack.c.bf16 %v2162_v18, %v2160_v26  ;;  %v1396_v50 = vpack.c.bf16 %v2167_v8, %v2165_v2  ;;  %v108_v59 = vunpack.c.h.bf16 %v2176_v6  ;;  %v2258_v45 = vld [vmem:[%s2314_s0 + $0x1d8] sm:$0xff] }
  0x85   :  { %v343_v28 = vadd.f32 %v342_v46, %v341_v33  ;;  %v324_v24 = vadd.f32 %v323_v39, %v322_v15  ;;  %v473_v27 = vadd.f32 %v472_v41, %v471_v25  ;;  %1387 = vmatprep.subr.bf16.mxu0 %v1386_v63  ;;  %v118_v56 = vunpack.c.h.bf16 %v2181_v61  ;;  %v2269_v33 = vld [vmem:[%s2314_s0 + $0x228] sm:$0x11]  ;;  %v640_v63 = vld [vmem:[#allocation2 + $0x460] sm:$0xff] }
  0x86   :  { %v454_v54 = vadd.f32 %v453_v16, %v452_v34  ;;  %v1398_v13 = vpack.c.bf16 %v2171_v20, %v2169_v17  ;;  %v178_v43 = vunpack.c.h.bf16 %v2190_v37  ;;  %v128_v22 = vunpack.c.h.bf16 %v2199_v5 }
  0x87   :  { %v325_v31 = vrot.slane %v324_v24, 4  ;;  %v695_v0 = vsel %vm687_vm1, %v473_v27, %v343_v28  ;;  %v188_v36 = vunpack.c.h.bf16 %v2204_v12  ;;  %v198_v4 = vunpack.c.h.bf16 %v2209_v40  ;;  %v659_v27 = vld [vmem:[#allocation2 + $0x4f8] sm:$0xff] }
  0x88   :  { %v455_v38 = vrot.slane %v454_v54, 4  ;;  %982 = vmatprep.mubr.f32.mxu1 %v695_v0  ;;  %1389 = vmatpush3.bf16.msra.mxu0 %v1388_v29  ;;  %v1400_v42 = vpack.c.bf16 %v2185_v53, %v2183_v10  ;;  %v1402_v48 = vpack.c.bf16 %v2215_v32, %v2213_v7  ;;  %v138_v62 = vunpack.c.h.bf16 %v2220_v58  ;;  %v658_v53 = vld [vmem:[#allocation2 + $0x4f0] sm:$0xff] }
  0x89   :  { %v326_v44 = vadd.f32 %v325_v31, %v324_v24  ;;  %1391 = vmatprep.subr.bf16.mxu0 %v1390_v11  ;;  %v208_v3 = vunpack.c.h.bf16 %v2230_v23  ;;  %v357_v51 = vadd.f32 %v118_v56, %v108_v59  ;;  %v487_v47 = vadd.f32 %v188_v36, %v178_v43 }
  0x8a   :  { %v456_v14 = vadd.f32 %v455_v38, %v454_v54  ;;  %v148_v19 = vunpack.c.h.bf16 %v2236_v49  ;;  %v158_v25 = vunpack.c.h.bf16 %v2241_v35  ;;  %v168_v39 = vunpack.c.h.bf16 %v2246_v30 }
  0x8b   :  { %v327_v1 = vrot.slane %v326_v44, 2  ;;  %v218_v26 = vunpack.c.h.bf16 %v2258_v45  ;;  %v358_v18 = vadd.f32 %v357_v51, %v128_v22  ;;  %v488_v46 = vadd.f32 %v487_v47, %v198_v4  ;;  %v643_v22 = vld [vmem:[#allocation2 + $0x478] sm:$0xff] }
  0x8c   :  { %v457_v21 = vrot.slane %v456_v14, 2  ;;  %1393 = vmatpush3.bf16.msra.mxu0 %v1392_v60  ;;  %v228_v16 = vunpack.c.h.bf16 %v2264_v9  ;;  %v238_v2 = vunpack.c.h.bf16 %v2269_v33  ;;  %v107_v8 = vunpack.c.l.bf16 %v2176_v6 }
  0x8d   :  { %v328_v55 = vadd.f32 %v327_v1, %v326_v44  ;;  %1395 = vmatprep.subr.bf16.mxu0 %v1394_v52  ;;  %v359_v41 = vadd.f32 %v358_v18, %v138_v62  ;;  %v489_v34 = vadd.f32 %v488_v46, %v208_v3  ;;  %v117_v20 = vunpack.c.l.bf16 %v2181_v61 }
  0x8e   :  { %v458_v15 = vadd.f32 %v457_v21, %v456_v14  ;;  %v1404_v24 = vpack.c.bf16 %v641_v57, %v640_v63  ;;  %v177_v29 = vunpack.c.l.bf16 %v2190_v37  ;;  %v187_v11 = vunpack.c.l.bf16 %v2204_v12 }
  0x8f   :  { %v329_v17 = vrot.slane %v328_v55, 1  ;;  %v360_v54 = vadd.f32 %v359_v41, %v148_v19  ;;  %v490_v60 = vadd.f32 %v489_v34, %v218_v26  ;;  %v127_v52 = vunpack.c.l.bf16 %v2199_v5 }
  0x90   :  { %v459_v28 = vrot.slane %v458_v15, 1  ;;  %1397 = vmatpush3.bf16.msra.mxu0 %v1396_v50  ;;  %v362_v31 = vsel %vm244_vm0, %v168_v39, 0.0  ;;  %v492_v61 = vsel %vm244_vm0, %v238_v2, 0.0  ;;  %v197_v7 = vunpack.c.l.bf16 %v2209_v40  ;;  %v642_v40 = vld [vmem:[#allocation2 + $0x470] sm:$0xff] }
  0x91   :  { %v330_v10 = vadd.f32 %v329_v17, %v328_v55  ;;  %1399 = vmatprep.subr.bf16.mxu0 %v1398_v13  ;;  %v361_v32 = vadd.f32 %v360_v54, %v158_v25  ;;  %v491_v37 = vadd.f32 %v490_v60, %v228_v16  ;;  %v137_v12 = vunpack.c.l.bf16 %v2220_v58 }
  0x92   :  { %v460_v6 = vadd.f32 %v459_v28, %v458_v15  ;;  %v344_v59 = vadd.f32 %v117_v20, %v107_v8  ;;  %v1406_v56 = vpack.c.bf16 %v659_v27, %v658_v53  ;;  %v207_v0 = vunpack.c.l.bf16 %v2230_v23 }
  0x93   :  { %v474_v38 = vadd.f32 %v187_v11, %v177_v29  ;;  %v363_v5 = vadd.f32 %v362_v31, %v361_v32  ;;  %v493_v13 = vadd.f32 %v492_v61, %v491_v37  ;;  %v147_v43 = vunpack.c.l.bf16 %v2236_v49 }
  0x94   :  { %v694_v50 = vsel %vm687_vm1, %v460_v6, %v330_v10  ;;  %1401 = vmatpush3.bf16.msra.mxu0 %v1400_v42  ;;  %v345_v44 = vadd.f32 %v344_v59, %v127_v52  ;;  %v157_v36 = vunpack.c.l.bf16 %v2241_v35  ;;  %v167_v58 = vunpack.c.l.bf16 %v2246_v30  ;;  %v1074_v6 = vld [vmem:[%s2316_s2] ss:$0 sm:$0xff]  ;;  %s1436_s2 = scalar_lea.vmem %s1066_s27, 32 }
  0x95   :  { %983 = vmatmul.mubr.f32.vlgmr.msra.gmra.mrb[2].mxu1 %v694_v50  ;;  %1403 = vmatprep.subr.bf16.mxu0 %v1402_v48  ;;  %v217_v4 = vunpack.c.l.bf16 %v2258_v45  ;;  %v475_v14 = vadd.f32 %v474_v38, %v197_v7  ;;  %v364_v62 = vrot.slane %v363_v5, 4  ;;  %v494_v23 = vrot.slane %v493_v13, 4  ;;  %p1437_p8 = scmp.ne.s32.totalorder %s1066_s27, %s1436_s2  ;;  %p1442_p10 = scmp.lt.s32.totalorder %s1436_s2, %s1436_s2 }
  0x96   :  { %v237_v1 = vunpack.c.l.bf16 %v2269_v33  ;;  %v346_v42 = vadd.f32 %v345_v44, %v137_v12  ;;  %v227_v3 = vunpack.c.l.bf16 %v2264_v9  ;;  %v1408_v49 = vpack.c.bf16 %v643_v22, %v642_v40 }
  0x97   :  { %v476_v51 = vadd.f32 %v475_v14, %v207_v0  ;;  %v365_v48 = vadd.f32 %v364_v62, %v363_v5  ;;  %v495_v47 = vadd.f32 %v494_v23, %v493_v13  ;;  %v349_v35 = vsel %vm244_vm0, %v167_v58, 0.0  ;;  %p1443_p11 = por %p1442_p10, %p1441_p9 }
  0x98   :  { %1405 = vmatpush3.bf16.msra.mxu0 %v1404_v24  ;;  %v347_v21 = vadd.f32 %v346_v42, %v147_v43  ;;  %v479_v39 = vsel %vm244_vm0, %v237_v1, 0.0 }
  0x99   :  { %1407 = vmatprep.subr.bf16.mxu0 %v1406_v56  ;;  %v477_v30 = vadd.f32 %v476_v51, %v217_v4  ;;  %v366_v19 = vrot.slane %v365_v48, 2  ;;  %v496_v45 = vrot.slane %v495_v47, 2  ;;  %p1444_p12 = pnand %p1443_p11, %p1437_p8 }
  0x9a   :  { %v348_v25 = vadd.f32 %v347_v21, %v157_v36 }
  0x9b   :  { %v478_v55 = vadd.f32 %v477_v30, %v227_v3  ;;  %v367_v33 = vadd.f32 %v366_v19, %v365_v48  ;;  %v497_v63 = vadd.f32 %v496_v45, %v495_v47 }
  0x9c   :  { %1409 = vmatpush3.bf16.msra.mxu0 %v1408_v49  ;;  %v350_v9 = vadd.f32 %v349_v35, %v348_v25 }
  0x9d   :  { %v480_v57 = vadd.f32 %v479_v39, %v478_v55  ;;  %v368_v26 = vrot.slane %v367_v33, 1  ;;  %v498_v18 = vrot.slane %v497_v63, 1 }
  0x9e   :  { %v351_v46 = vrot.slane %v350_v9, 4 }
  0x9f   :  { %v481_v15 = vrot.slane %v480_v57, 4  ;;  %v369_v16 = vadd.f32 %v368_v26, %v367_v33  ;;  %v499_v2 = vadd.f32 %v498_v18, %v497_v63 }
  0xa0   :  { %v352_v8 = vadd.f32 %v351_v46, %v350_v9 }
  0xa1   :  { %v482_v17 = vadd.f32 %v481_v15, %v480_v57  ;;  %v697_v41 = vsel %vm687_vm1, %v499_v2, %v369_v16 }
  0xa2   :  { %v353_v34 = vrot.slane %v352_v8, 2  ;;  %1052 = vmatprep.mubr.f32.mxu0 %v697_v41 }
  0xa3   :  { %v483_v20 = vrot.slane %v482_v17, 2 }
  0xa4   :  { %v354_v28 = vadd.f32 %v353_v34, %v352_v8 }
  0xa5   :  { %v484_v24 = vadd.f32 %v483_v20, %v482_v17 }
  0xa6   :  { %v355_v29 = vrot.slane %v354_v28, 1 }
  0xa7   :  { %v485_v11 = vrot.slane %v484_v24, 1 }
  0xa8   :  { %v356_v10 = vadd.f32 %v355_v29, %v354_v28 }
  0xa9   :  { %v486_v53 = vadd.f32 %v485_v11, %v484_v24 }
  0xab   :  { %v696_v27 = vsel %vm687_vm1, %v486_v53, %v356_v10 }
  0xac   :  { %1053 = vmatmul.mubr.f32.vlgmr.msra.gmra.mrb[4].mxu0 %v696_v27 }
 0x11d   :  { %v1107_v54 = vpop.f32.mrb[0].mxu0 }
 0x11e   :  { %v1108_v60 = vpop.f32.mrb[1].mxu0 }
 0x11f   :  { %v1109_v52 = vadd.f32 %v1108_v60, %v1107_v54 }
 0x121   :  { %v775_v31 = vadd.f32 %v1109_v52, %v1074_v6 }
 0x134   :  { %v1142_v61 = vpop.f32.mrb[0].mxu1 }
 0x135   :  { %v1143_v7 = vpop.f32.mrb[1].mxu1 }
 0x136   :  { %v1144_v32 = vadd.f32 %v1143_v7, %v1142_v61 }
 0x138   :  { %v845_v37 = vadd.f32 %v1144_v32, %v775_v31 }
 0x152   :  { %v1177_v12 = vpop.f32.mrb[2].mxu0 }
 0x153   :  { %v1178_v59 = vpop.f32.mrb[3].mxu0 }
 0x154   :  { %v1179_v50 = vadd.f32 %v1178_v59, %v1177_v12 }
 0x156   :  { %v915_v56 = vadd.f32 %v1179_v50, %v845_v37 }
 0x168   :  { %v1212_v0 = vpop.f32.mrb[2].mxu1 }
 0x169   :  { %v1213_v38 = vpop.f32.mrb[3].mxu1 }
 0x16a   :  { %v1214_v5 = vadd.f32 %v1213_v38, %v1212_v0 }
 0x16c   :  { %v985_v13 = vadd.f32 %v1214_v5, %v915_v56 }
 0x17f   :  { %v1247_v43 = vpop.f32.mrb[4].mxu0 }
 0x180   :  { %v1248_v44 = vpop.f32.mrb[5].mxu0 }
 0x181   :  { %v1249_v40 = vadd.f32 %v1248_v44, %v1247_v43 }
 0x183   :  { %v1055_v22 = vadd.f32 %v1249_v40, %v985_v13 }
 0x185   :  { %1058 = vst [vmem:[#allocation5] sm:$0x3] %v1055_v22 }
 0x186   :  { %1447 = shalt.err (!%p1444_p12)
}
 0x187   :  { %s1448_s30 = scalar_lea.hbm %s2317_s3, 32 }
 0x188   :  { %p1449_p13 = scmp.ne.s32.totalorder %s2317_s3, %s1448_s30  ;;  %p1452_p0 = scmp.lt.u32.totalorder %s1448_s30, %s2317_s3 }
 0x18a   :  { %p1454_p1 = pnand %p1452_p0, %p1449_p13 }
 0x18c   :  { %1457 = shalt.err (!%p1454_p1)
}
 0x18d   :  { %1068 = dma.vmem_to_hbm [thread:$0]  %s1066_s27, 32, %s2317_s3, [#allocation4]  }
 0x18e   :  { %1460 = dma.done.wait [#allocation4], 32  }
 0x18f   :  { %1461 = vsyncadd [#allocation4], 4294967264 }
 0x190   :  { %1072 = vsyncpa [#allocation3], 1 }
 0x191   :  { %1073 = vsyncpa [#allocation4], 1 }

</bundles_post_ra>
